<compile_context>
chip_gen: v7x
topology: tpu7x:2x2x1
jax: 0.10.0
libtpu: 0.0.40
codegen_flags: <defaults>
</compile_context>

<pallas_src>
import math

import jax
import jax.numpy as jnp
from jax.experimental import pallas as pl
from jax.experimental.pallas import tpu as pltpu

_TARGET_BLOCK_BYTES = 2 << 20        # ~2 MiB of payload per block
_MAX_LANE_TILE = 2048                # lane-axis cap (multiple of 128)
_VMEM_LIMIT_BYTES = 32 << 20         # 3 blocks x 2 buffers x ~2 MiB << 32 MiB


def _cdiv(a, b):
    return -(-a // b)


def _round_up(a, b):
    return _cdiv(a, b) * b


def _sublane_base(itemsize):
    # Packed-sublane tile: 8 rows for f32, 16 for bf16/f16, 32 for int8/fp8.
    return max(8, 32 // itemsize)


def _glu_kernel(a_ref, g_ref, o_ref):
    a = a_ref[...].astype(jnp.float32)
    g = g_ref[...].astype(jnp.float32)
    # sigmoid(g) == 0.5 * tanh(g / 2) + 0.5  (exact identity): tanh goes to
    # the EUP slot and avoids the expensive f32 VPU divide of 1/(1+exp(-g)).
    sig = 0.5 * jnp.tanh(0.5 * g) + 0.5
    o_ref[...] = (a * sig).astype(o_ref.dtype)


def _choose_lane_width(M, min_rows):
    """Largest multiple-of-128 divisor of M (<= _MAX_LANE_TILE) that leaves at
    least `min_rows` sublane rows per half slab; 128 if none qualifies; None
    if M has no multiple-of-128 divisor at all."""
    if M % 128 != 0:
        return None
    for lane in range(min(_MAX_LANE_TILE, M), 127, -128):
        if M % lane == 0 and M // lane >= min_rows:
            return lane
    return 128


def _pick_tiles(O, R, L, itemsize):
    """(o_tile, r_tile, l_tile) targeting ~_TARGET_BLOCK_BYTES per VMEM block,
    including the (sublane, lane) padding of the physical layout."""
    sub = _sublane_base(itemsize)
    budget = max(_TARGET_BLOCK_BYTES // itemsize, 8 * 128)

    # Lane tile: whole lane axis when it fits the budget; otherwise a
    # multiple-of-128 slice (the final partial block covers the remainder).
    lanes_max = max(128, budget // sub)
    if _round_up(L, 128) <= lanes_max:
        l_tile = L
    else:
        l_tile = max(128, (lanes_max // 128) * 128)
    lanes_pad = _round_up(l_tile, 128)

    # Sublane tile (rows of the per-half slab).
    rows = max(1, budget // lanes_pad)
    if R <= rows:
        r_tile = R
    else:
        r_tile = max(sub, (rows // sub) * sub)

    # Leading tile: fold several leading rows into one block so small slabs
    # don't turn into one tiny grid step per leading row.
    o_tile = min(O, max(1, rows // _round_up(r_tile, sub)))

    # Keep >= 2 grid steps when there is enough data for the second
    # TensorCore (v7x megacore) to matter.
    if (_cdiv(O, o_tile) * _cdiv(R, r_tile) * _cdiv(L, l_tile) == 1
            and O * R * L * itemsize > (1 << 20)):
        if O > 1:
            o_tile = _cdiv(O, 2)
        elif R > sub:
            r_tile = max(sub, (_cdiv(R, 2) // sub) * sub)
        elif l_tile >= 256 and l_tile % 256 == 0:
            l_tile //= 2

    return o_tile, r_tile, l_tile


def _glu_call(x4, out_dtype):
    """x4: (O, 2, R, L); the size-2 axis separates the out/gate halves."""
    O, _, R, L = x4.shape
    itemsize = jnp.dtype(x4.dtype).itemsize
    o_tile, r_tile, l_tile = _pick_tiles(O, R, L, itemsize)
    grid = (_cdiv(O, o_tile), _cdiv(R, r_tile), _cdiv(L, l_tile))

    in_a = pl.BlockSpec((o_tile, None, r_tile, l_tile),
                        lambda o, r, l: (o, 0, r, l))
    in_g = pl.BlockSpec((o_tile, None, r_tile, l_tile),
                        lambda o, r, l: (o, 1, r, l))
    out_spec = pl.BlockSpec((o_tile, r_tile, l_tile),
                            lambda o, r, l: (o, r, l))

    return pl.pallas_call(
        _glu_kernel,
        out_shape=jax.ShapeDtypeStruct((O, R, L), out_dtype),
        grid_spec=pltpu.PrefetchScalarGridSpec(
            num_scalar_prefetch=0,
            grid=grid,
            in_specs=[in_a, in_g],
            out_specs=out_spec,
        ),
        compiler_params=pltpu.CompilerParams(
            dimension_semantics=("parallel", "parallel", "parallel"),
            vmem_limit_bytes=_VMEM_LIMIT_BYTES,
        ),
    )(x4, x4)


def glu(x, dim=1):
    """GLU: out, gate = split(x, 2, dim); return out * sigmoid(gate)."""
    nd = x.ndim
    if dim < 0:
        dim += nd
    if not 0 <= dim < nd:
        raise ValueError(f"dim {dim} out of range for rank {nd} input")
    S = x.shape[dim]
    if S % 2 != 0:
        raise ValueError("GLU split dimension must have an even size")
    H = S // 2
    O = math.prod(x.shape[:dim])
    I = math.prod(x.shape[dim + 1:])
    M = H * I                                  # contiguous elems per half slab
    out_shape = x.shape[:dim] + (H,) + x.shape[dim + 1:]
    if M == 0 or O == 0:
        return jnp.zeros(out_shape, x.dtype)

    itemsize = jnp.dtype(x.dtype).itemsize
    L = _choose_lane_width(M, _sublane_base(itemsize))
    if L is None:
        # TODO(synk): slab has no multiple-of-128 factor; fall back to one
        # sublane row per slab (lane-dense tiles + one partial edge block) --
        # correct, but not the fully packed ideal layout.
        R, L = 1, M
    else:
        R = M // L

    # Free contiguous reshape: (..., 2H, ...) -> (O, 2, R, L); the size-2 axis
    # separates torch.chunk's two halves exactly.
    out = _glu_call(x.reshape(O, 2, R, L), x.dtype)
    return out.reshape(out_shape)


def _ref_glu(x, dim):
    a, g = jnp.split(x, 2, axis=dim)
    sig = jax.nn.sigmoid(g.astype(jnp.float32))
    return (a.astype(jnp.float32) * sig).astype(x.dtype)


if __name__ == "__main__":
    key = jax.random.PRNGKey(0)
    ks = jax.random.split(key, 5)

    tests = [
        # (shape, dim, dtype, atol, rtol)
        ((2, 8, 16), 1, jnp.float32, 1e-5, 1e-5),      # Conformer-style (B, 2C, T)
        ((2, 16, 1024), 1, jnp.float32, 1e-5, 1e-5),   # lane-dense slab path
        ((8, 64), -1, jnp.float32, 1e-5, 1e-5),        # split along the last axis
        ((2, 8, 256), 1, jnp.bfloat16, 2e-2, 2e-2),    # bf16 (packed sublanes)
        ((1, 544, 2048), 1, jnp.float32, 1e-5, 1e-5),  # multi-step grid + edge block
    ]
    for i, (shape, dim, dtype, atol, rtol) in enumerate(tests):
        x = jax.random.normal(ks[i], shape, dtype=jnp.float32).astype(dtype)
        got = jax.block_until_ready(glu(x, dim=dim))
        want = _ref_glu(x, dim)
        assert got.shape == want.shape, (got.shape, want.shape)
        assert jnp.allclose(got.astype(jnp.float32), want.astype(jnp.float32),
                            atol=atol, rtol=rtol), f"mismatch on test {i}"

    print("KERNEL_OK")
</pallas_src>

<mosaic_0001>
module attributes {stable_mosaic.version = 11 : i64} {
  func.func @_glu_kernel(%arg0: i32, %arg1: i32, %arg2: i32, %arg3: memref<2x1x1x64xf32, #tpu.memory_space<vmem>>, %arg4: memref<2x1x1x64xf32, #tpu.memory_space<vmem>>, %arg5: memref<2x1x64xf32, #tpu.memory_space<vmem>>) attributes {dimension_semantics = [#tpu.dimension_semantics<parallel>, #tpu.dimension_semantics<parallel>, #tpu.dimension_semantics<parallel>], iteration_bounds = array<i64: 1, 1, 1>, scalar_prefetch = 0 : i64, scratch_operands = 0 : i64, tpu.core_type = #tpu.core_type<tc>, window_params = [{transform_indices = @transform_0, window_bounds = array<i64: 2, 1, 1, 64>}, {transform_indices = @transform_1, window_bounds = array<i64: 2, 1, 1, 64>}, {transform_indices = @transform_2, window_bounds = array<i64: 2, 1, 64>}]} {
    %c0 = arith.constant 0 : index
    %c0_0 = arith.constant 0 : index
    %c0_1 = arith.constant 0 : index
    %c0_2 = arith.constant 0 : index
    %0 = vector.load %arg3[%c0, %c0_0, %c0_1, %c0_2] : memref<2x1x1x64xf32, #tpu.memory_space<vmem>>, vector<2x1x1x64xf32>
    %1 = vector.shape_cast %0 : vector<2x1x1x64xf32> to vector<2x1x64xf32>
    %c0_3 = arith.constant 0 : index
    %c0_4 = arith.constant 0 : index
    %c0_5 = arith.constant 0 : index
    %c0_6 = arith.constant 0 : index
    %2 = vector.load %arg4[%c0_3, %c0_4, %c0_5, %c0_6] : memref<2x1x1x64xf32, #tpu.memory_space<vmem>>, vector<2x1x1x64xf32>
    %3 = vector.shape_cast %2 : vector<2x1x1x64xf32> to vector<2x1x64xf32>
    %cst = arith.constant 5.000000e-01 : f32
    %4 = vector.broadcast %cst : f32 to vector<2x1x64xf32>
    %5 = arith.mulf %4, %3 : vector<2x1x64xf32>
    %6 = math.tanh %5 : vector<2x1x64xf32>
    %cst_7 = arith.constant 5.000000e-01 : f32
    %7 = vector.broadcast %cst_7 : f32 to vector<2x1x64xf32>
    %8 = arith.mulf %7, %6 : vector<2x1x64xf32>
    %cst_8 = arith.constant 5.000000e-01 : f32
    %9 = vector.broadcast %cst_8 : f32 to vector<2x1x64xf32>
    %10 = arith.addf %8, %9 : vector<2x1x64xf32>
    %11 = arith.mulf %1, %10 : vector<2x1x64xf32>
    %c0_9 = arith.constant 0 : index
    %c0_10 = arith.constant 0 : index
    %c0_11 = arith.constant 0 : index
    %12 = vector.load %arg5[%c0_9, %c0_10, %c0_11] : memref<2x1x64xf32, #tpu.memory_space<vmem>>, vector<2x1x64xf32>
    tpu.vector_store %arg5[%c0_9, %c0_10, %c0_11], %11 {strides = array<i32>} : memref<2x1x64xf32, #tpu.memory_space<vmem>>, vector<2x1x64xf32>,
    return
  }
  func.func @transform_0(%arg0: i32, %arg1: i32, %arg2: i32) -> (i32, i32, i32, i32) {
    %c0_i32 = arith.constant 0 : i32
    %c0_i32_0 = arith.constant 0 : i32
    return %arg0, %c0_i32, %arg1, %arg2 : i32, i32, i32, i32
  }
  func.func @transform_1(%arg0: i32, %arg1: i32, %arg2: i32) -> (i32, i32, i32, i32) {
    %c1_i32 = arith.constant 1 : i32
    %c0_i32 = arith.constant 0 : i32
    return %arg0, %c1_i32, %arg1, %arg2 : i32, i32, i32, i32
  }
  func.func @transform_2(%arg0: i32, %arg1: i32, %arg2: i32) -> (i32, i32, i32) {
    %c0_i32 = arith.constant 0 : i32
    return %arg0, %arg1, %arg2 : i32, i32, i32
  }
}

</mosaic_0001>

<bundles_post_ra>
// kernel: tpu_custom_call.1
= control target key start
LH: loop header
LB: loop body
LE: loop exit
PB: predicated region body
PF: predicated region fallthrough
CT: control target
= control target key end

     0   :  { %7 = vsyncpa [#allocation3], 0  ;;  %s228_s0 = inlined_call_operand.hbm [shape: f32[2,2,1,64], index: 0, kind: input, shape index: {}]   ;;  %s229_s1 = inlined_call_operand.hbm [shape: f32[2,2,1,64], index: 1, kind: input, shape index: {}]   ;;  %s230_s2 = inlined_call_operand.hbm [shape: f32[2,1,64], index: 2, kind: output, shape index: {}]  }
   0x1   :  { %8 = vsyncpa [#allocation6], 0 }
   0x2   :  { %9 = vsyncpa [#allocation4], 0  ;;  %s161_s9 = smov [#allocation2]   ;;  %s86_s13 = scalar_lea.hbm %s228_s0, 32 }
   0x3   :  { %s15_s10 = sshll.u32 %s161_s9, 4  ;;  %p87_p0 = scmp.ne.s32.totalorder %s228_s0, %s86_s13  ;;  %s16_s10 = int_to_ptr.vmem [resolvable:$true] %s15_s10 }
   0x4   :  { %s88_s18 = scalar_lea.hbm %s228_s0, 64  ;;  %p90_p2 = scmp.lt.u32.totalorder %s86_s13, %s228_s0 }
   0x5   :  { %p89_p1 = scmp.lt.u32.totalorder %s88_s18, %s86_s13 }
   0x7   :  { %p91_p3 = por %p90_p2, %p89_p1 }
   0x9   :  { %p92_p4 = pnand %p91_p3, %p87_p0 }
   0xb   :  { %95 = shalt.err (!%p92_p4)
}
   0xc   :  { %s96_s21 = scalar_lea.vmem %s16_s10, 32  ;;  %p101_p6 = scmp.lt.s32.totalorder %s16_s10, %s16_s10 }
   0xd   :  { %p97_p5 = scmp.ne.s32.totalorder %s16_s10, %s96_s21  ;;  %p102_p7 = scmp.lt.s32.totalorder %s96_s21, %s96_s21 }
   0xf   :  { %p103_p8 = por %p102_p7, %p101_p6 }
  0x11   :  { %p104_p9 = pnand %p103_p8, %p97_p5 }
  0x13   :  { %107 = shalt.err (!%p104_p9)
}
  0x14   :  { %s162_s22 = smov 32   ;;  %s163_s23 = smov 16  }
  0x15   :  { %s164_s24 = smov 1   ;;  %s27_s29 = scalar_lea.hbm %s229_s1, 16 }
  0x16   :  { %21 = dma.hbm_to_vmem [thread:$0]  %s228_s0, 32, %s16_s10, [#allocation3], %s162_s22, %s163_s23, %s164_s24  }
  0x17   :  { %s165_s30 = smov [#allocation5]   ;;  %s132_s6 = scalar_lea.hbm %s229_s1, 48 }
  0x18   :  { %s28_s3 = sshll.u32 %s165_s30, 4  ;;  %p109_p10 = scmp.ne.s32.totalorder %s27_s29, %s132_s6  ;;  %s29_s3 = int_to_ptr.vmem [resolvable:$true] %s28_s3 }
  0x19   :  { %s110_s9 = scalar_lea.hbm %s229_s1, 64  ;;  %p111_p11 = scmp.lt.u32.totalorder %s27_s29, %s229_s1 }
  0x1a   :  { %p112_p12 = scmp.lt.u32.totalorder %s110_s9, %s132_s6  ;;  %p114_p0 = scmp.lt.u32.totalorder %s132_s6, %s27_s29 }
  0x1c   :  { %p113_p13 = por %p112_p12, %p111_p11 }
  0x1e   :  { %p115_p1 = por %p114_p0, %p113_p13 }
  0x20   :  { %p116_p2 = pnand %p115_p1, %p109_p10 }
  0x22   :  { %119 = shalt.err (!%p116_p2)
}
  0x23   :  { %s120_s0 = scalar_lea.vmem %s29_s3, 32  ;;  %p125_p4 = scmp.lt.s32.totalorder %s29_s3, %s29_s3 }
  0x24   :  { %p121_p3 = scmp.ne.s32.totalorder %s29_s3, %s120_s0  ;;  %p126_p5 = scmp.lt.s32.totalorder %s120_s0, %s120_s0 }
  0x26   :  { %p127_p6 = por %p126_p5, %p125_p4 }
  0x28   :  { %p128_p7 = pnand %p127_p6, %p121_p3 }
  0x2a   :  { %131 = shalt.err (!%p128_p7)
}
  0x2b   :  { %34 = dma.hbm_to_vmem [thread:$0]  %s27_s29, 32, %s29_s3, [#allocation6], %s162_s22, %s163_s23, %s164_s24  }
  0x2c   :  { %155 = dma.done.wait [#allocation3], 32  }
  0x2d   :  { %156 = vsyncadd [#allocation3], 4294967264 }
  0x2e   :  { %157 = dma.done.wait [#allocation6], 32  }
  0x2f   :  { %158 = vsyncadd [#allocation6], 4294967264  ;;  %v43_v0 = vld [vmem:[#allocation5] sm:$0x1]  ;;  %v44_v2 = vld [vmem:[#allocation5 + $0x1] sm:$0x1] }
  0x30   :  { %v45_v1 = vmul.f32 0.5, %v43_v0  ;;  %v46_v3 = vmul.f32 0.5, %v44_v2  ;;  %v41_v7 = vld [vmem:[#allocation2] sm:$0x1]  ;;  %v42_v10 = vld [vmem:[#allocation2 + $0x1] sm:$0x1] }
  0x31   :  { %s166_s1 = smov [#allocation7]   ;;  %vm55_vm0 = vcmask 516096  }
  0x32   :  { %82 = vtanh.f32 %v45_v1  ;;  %s63_s10 = sshll.u32 %s166_s1, 4  ;;  %s64_s10 = int_to_ptr.vmem [resolvable:$true] %s63_s10 }
  0x33   :  { %84 = vtanh.f32 %v46_v3  ;;  %s133_s13 = scalar_lea.vmem %s64_s10, 32  ;;  %p138_p9 = scmp.lt.s32.totalorder %s64_s10, %s64_s10 }
  0x34   :  { %p134_p8 = scmp.ne.s32.totalorder %s64_s10, %s133_s13  ;;  %p139_p10 = scmp.lt.s32.totalorder %s133_s13, %s133_s13 }
  0x36   :  { %p140_p11 = por %p139_p10, %p138_p9 }
  0x38   :  { %p141_p12 = pnand %p140_p11, %p134_p8 }
  0x3c   :  { %v83_v4 = vpop.eup %82 }
  0x3d   :  { %v85_v5 = vpop.eup %84  ;;  %v49_v6 = vmul.f32 0.5, %v83_v4 }
  0x3e   :  { %v50_v8 = vmul.f32 0.5, %v85_v5 }
  0x3f   :  { %v51_v9 = vadd.f32 0.5, %v49_v6 }
  0x40   :  { %v52_v11 = vadd.f32 0.5, %v50_v8 }
  0x41   :  { %v53_v12 = vmul.f32 %v51_v9, %v41_v7 }
  0x42   :  { %v54_v13 = vmul.f32 %v52_v11, %v42_v10 }
  0x43   :  { %56 = vst.msk [vmem:[#allocation7] sm:$0x1] %vm55_vm0, %v53_v12 }
  0x44   :  { %57 = vst.msk [vmem:[#allocation7 + $0x1] sm:$0x1] %vm55_vm0, %v54_v13 }
  0x45   :  { %144 = shalt.err (!%p141_p12)
}
  0x46   :  { %s145_s16 = scalar_lea.hbm %s230_s2, 32 }
  0x47   :  { %p146_p13 = scmp.ne.s32.totalorder %s230_s2, %s145_s16  ;;  %p149_p0 = scmp.lt.u32.totalorder %s145_s16, %s230_s2 }
  0x49   :  { %p151_p1 = pnand %p149_p0, %p146_p13 }
  0x4b   :  { %154 = shalt.err (!%p151_p1)
}
  0x4c   :  { %69 = dma.vmem_to_hbm [thread:$0]  %s64_s10, 32, %s230_s2, [#allocation4], %s163_s23, %s163_s23, %s164_s24  }
  0x4d   :  { %159 = dma.done.wait [#allocation4], 32  }
  0x4e   :  { %160 = vsyncadd [#allocation4], 4294967264 }
  0x4f   :  { %73 = vsyncpa [#allocation3], 1 }
  0x50   :  { %74 = vsyncpa [#allocation6], 1 }
  0x51   :  { %75 = vsyncpa [#allocation4], 1 }

</bundles_post_ra>
